<compile_context>
chip_gen: v6e
topology: v6e:2x2x1
jax: 0.10.0
libtpu: 0.0.40
codegen_flags: <defaults>
</compile_context>

<pallas_src>
import functools

import jax
import jax.numpy as jnp
from jax.experimental import pallas as pl
from jax.experimental.pallas import tpu as pltpu

INPUT_SIZE = 15                       # 15x15 grid -> 225 features
IN_FEATURES = INPUT_SIZE * INPUT_SIZE
HIDDEN_1 = 64
HIDDEN_2 = 64
HIDDEN_3 = 32
OUTPUT_VEC = 8                        # len(keylog.Keyboard) — fixed to 8 keys
LEAKY_SLOPE = 0.01                    # nn.LeakyReLU default negative_slope
DEFAULT_BLOCK_B = 4096                # batch tile (multiple of 16)
VMEM_LIMIT_BYTES = 48 * 1024 * 1024   # portable across v5e/v6e/v7x


def _leaky_relu(x):
    return jnp.where(x >= 0, x, LEAKY_SLOPE * x)


def _round_up(n, m):
    return ((n + m - 1) // m) * m


def mknn_kernel(x_ref, w1_ref, b1_ref, w2_ref, b2_ref,
                w3_ref, b3_ref, w4_ref, b4_ref, out_ref):
    """Fused 4-layer MLP on one (TB, 225) batch tile.

    x arrives in its source dtype (f32 or bf16) and is cast to bf16 once in
    VMEM for MXU-native matmuls; accumulation, bias add and LeakyReLU are f32.
    Dropout is identity (inference).
    """
    x = x_ref[...].astype(jnp.bfloat16)                       # (TB, 225)

    # Layer 1: 225 -> 64 (Mosaic lane-pads K=225 internally)
    h = jnp.dot(x, w1_ref[...], preferred_element_type=jnp.float32) + b1_ref[...]
    h = _leaky_relu(h)

    # Layer 2: 64 -> 64
    h = jnp.dot(h.astype(jnp.bfloat16), w2_ref[...],
                preferred_element_type=jnp.float32) + b2_ref[...]
    h = _leaky_relu(h)

    # Layer 3: 64 -> 32
    h = jnp.dot(h.astype(jnp.bfloat16), w3_ref[...],
                preferred_element_type=jnp.float32) + b3_ref[...]
    h = _leaky_relu(h)

    # Layer 4: 32 -> OUTPUT_VEC (no activation)
    out = jnp.dot(h.astype(jnp.bfloat16), w4_ref[...],
                  preferred_element_type=jnp.float32) + b4_ref[...]
    out_ref[...] = out.astype(out_ref.dtype)


@functools.partial(jax.jit, static_argnames=("block_b",))
def mknn_forward(x, params, block_b=None):
    """x: any shape reshapable to (-1, 225) (matches torch .view(-1, 225)).

    Float inputs (f32 / bf16) are consumed directly; non-float inputs are cast
    to f32 (matching the torch `.float()` call).
    """
    x_flat = jnp.reshape(x, (-1, IN_FEATURES))
    if not jnp.issubdtype(x_flat.dtype, jnp.floating):
        x_flat = x_flat.astype(jnp.float32)
    B = x_flat.shape[0]

    (w1, b1), (w2, b2), (w3, b3), (w4, b4) = params

    # One-time (tiny) weight prep: bf16 matmul inputs, f32 biases.
    w1p = w1.astype(jnp.bfloat16)
    w2p = w2.astype(jnp.bfloat16)
    w3p = w3.astype(jnp.bfloat16)
    w4p = w4.astype(jnp.bfloat16)
    b1p = b1.astype(jnp.float32)
    b2p = b2.astype(jnp.float32)
    b3p = b3.astype(jnp.float32)
    b4p = b4.astype(jnp.float32)

    # Batch tiling: big tiles to amortize per-grid-step overhead, but keep at
    # least 2 grid steps when possible so v7x's two TensorCores both get work.
    if block_b is None:
        TB = min(DEFAULT_BLOCK_B, _round_up(pl.cdiv(B, 2), 16))
        if TB >= B:
            TB = B                    # single block == full dim (always legal)
    else:
        TB = min(int(block_b), B)
    if TB != B and TB % 8 != 0:
        raise ValueError(f"block_b={TB} must be a multiple of 8 (or equal B)")

    grid = (pl.cdiv(B, TB),)          # ragged tail handled by Pallas clipping
    resident = lambda i: (0, 0)       # same block every step -> stays in VMEM

    n_weight_elems = (IN_FEATURES * HIDDEN_1 + HIDDEN_1 * HIDDEN_2
                      + HIDDEN_2 * HIDDEN_3 + HIDDEN_3 * OUTPUT_VEC)
    cost = pl.CostEstimate(
        flops=2 * B * n_weight_elems,
        transcendentals=0,
        bytes_accessed=(B * IN_FEATURES * x_flat.dtype.itemsize
                        + B * OUTPUT_VEC * 4
                        + 2 * n_weight_elems),
    )

    out = pl.pallas_call(
        mknn_kernel,
        out_shape=jax.ShapeDtypeStruct((B, OUTPUT_VEC), jnp.float32),
        grid=grid,
        in_specs=[
            pl.BlockSpec((TB, IN_FEATURES), lambda i: (i, 0)),    # x tile
            pl.BlockSpec((IN_FEATURES, HIDDEN_1), resident),      # w1
            pl.BlockSpec((1, HIDDEN_1), resident),                # b1
            pl.BlockSpec((HIDDEN_1, HIDDEN_2), resident),         # w2
            pl.BlockSpec((1, HIDDEN_2), resident),                # b2
            pl.BlockSpec((HIDDEN_2, HIDDEN_3), resident),         # w3
            pl.BlockSpec((1, HIDDEN_3), resident),                # b3
            pl.BlockSpec((HIDDEN_3, OUTPUT_VEC), resident),       # w4
            pl.BlockSpec((1, OUTPUT_VEC), resident),              # b4
        ],
        out_specs=pl.BlockSpec((TB, OUTPUT_VEC), lambda i: (i, 0)),
        compiler_params=pltpu.CompilerParams(
            dimension_semantics=("parallel",),
            vmem_limit_bytes=VMEM_LIMIT_BYTES),
        cost_estimate=cost,
    )(x_flat, w1p, b1p, w2p, b2p, w3p, b3p, w4p, b4p)

    return out


def init_params(key):
    """Deterministic init matching nn.Linear defaults (U(-1/sqrt(in), 1/sqrt(in))).

    Weights stored as (in_features, out_features) so the kernel computes x @ W.
    Biases stored as (1, out) rows for TPU-friendly broadcasting.
    """
    dims = [(IN_FEATURES, HIDDEN_1),
            (HIDDEN_1, HIDDEN_2),
            (HIDDEN_2, HIDDEN_3),
            (HIDDEN_3, OUTPUT_VEC)]
    params = []
    for fan_in, fan_out in dims:
        key, kw, kb = jax.random.split(key, 3)
        bound = 1.0 / jnp.sqrt(fan_in)
        w = jax.random.uniform(kw, (fan_in, fan_out), jnp.float32, -bound, bound)
        b = jax.random.uniform(kb, (1, fan_out), jnp.float32, -bound, bound)
        params.append((w, b))
    return params


def ref_forward(x, params):
    """Pure-JAX full-f32 reference of the same forward pass (eval mode)."""
    h = jnp.reshape(x, (-1, IN_FEATURES)).astype(jnp.float32)
    for i, (w, b) in enumerate(params):
        h = h @ w + b
        if i < 3:
            h = jnp.where(h >= 0, h, LEAKY_SLOPE * h)
    return h


def ref_forward_bf16(x, params):
    """Reference that mimics the kernel's bf16-input / f32-accum matmuls, so
    the Pallas kernel can be checked with a *tight* tolerance."""
    h = jnp.reshape(x, (-1, IN_FEATURES)).astype(jnp.float32)
    for i, (w, b) in enumerate(params):
        h = jnp.dot(h.astype(jnp.bfloat16), w.astype(jnp.bfloat16),
                    preferred_element_type=jnp.float32) + b.astype(jnp.float32)
        if i < 3:
            h = jnp.where(h >= 0, h, LEAKY_SLOPE * h)
    return h


if __name__ == "__main__":
    key = jax.random.PRNGKey(0)
    key, kx = jax.random.split(key)

    params = init_params(key)

    # Small case consistent with the module's view(-1, 225): batch of 2 grids.
    # TB == B here (single full block, no padding anywhere).
    x = jax.random.normal(kx, (2, INPUT_SIZE, INPUT_SIZE), jnp.float32)
    out = mknn_forward(x, params)
    jax.block_until_ready(out)
    assert out.shape == (2, OUTPUT_VEC), out.shape
    assert out.dtype == jnp.float32, out.dtype
    # Loose check vs. pure-f32 math, tight check vs. bf16-emulating reference.
    ref = ref_forward(x, params)
    assert jnp.allclose(out, ref, atol=3e-2, rtol=3e-2), \
        float(jnp.max(jnp.abs(out - ref)))
    ref_bf16 = ref_forward_bf16(x, params)
    assert jnp.allclose(out, ref_bf16, atol=2e-3, rtol=2e-3), \
        float(jnp.max(jnp.abs(out - ref_bf16)))

    # Multi-tile path with a ragged final block (no wrapper-side batch pad):
    # explicit block_b=128 -> grid of 3 steps, last block partial.
    key, kx2 = jax.random.split(key)
    x2 = jax.random.normal(kx2, (300, INPUT_SIZE, INPUT_SIZE), jnp.float32)
    out2 = mknn_forward(x2, params, block_b=128)
    jax.block_until_ready(out2)
    assert out2.shape == (300, OUTPUT_VEC), out2.shape
    ref2 = ref_forward(x2, params)
    assert jnp.allclose(out2, ref2, atol=3e-2, rtol=3e-2), \
        float(jnp.max(jnp.abs(out2 - ref2)))
    ref2_bf16 = ref_forward_bf16(x2, params)
    assert jnp.allclose(out2, ref2_bf16, atol=2e-3, rtol=2e-3), \
        float(jnp.max(jnp.abs(out2 - ref2_bf16)))

    # Auto tile selection on the same ragged batch (TB=160, grid of 2 steps —
    # exercises the >=2-step / partial-final-block path used on v7x).
    out3 = mknn_forward(x2, params)
    jax.block_until_ready(out3)
    assert out3.shape == (300, OUTPUT_VEC), out3.shape
    assert jnp.allclose(out3, ref2_bf16, atol=2e-3, rtol=2e-3), \
        float(jnp.max(jnp.abs(out3 - ref2_bf16)))

    print("KERNEL_OK")
</pallas_src>

<mosaic_0001>
module attributes {stable_mosaic.version = 11 : i64} {
  func.func @mknn_kernel(%arg0: i32, %arg1: memref<2x225xf32, #tpu.memory_space<vmem>>, %arg2: memref<225x64xbf16, #tpu.memory_space<vmem>>, %arg3: memref<1x64xf32, #tpu.memory_space<vmem>>, %arg4: memref<64x64xbf16, #tpu.memory_space<vmem>>, %arg5: memref<1x64xf32, #tpu.memory_space<vmem>>, %arg6: memref<64x32xbf16, #tpu.memory_space<vmem>>, %arg7: memref<1x32xf32, #tpu.memory_space<vmem>>, %arg8: memref<32x8xbf16, #tpu.memory_space<vmem>>, %arg9: memref<1x8xf32, #tpu.memory_space<vmem>>, %arg10: memref<2x8xf32, #tpu.memory_space<vmem>>) attributes {dimension_semantics = [#tpu.dimension_semantics<parallel>], iteration_bounds = array<i64: 1>, scalar_prefetch = 0 : i64, scratch_operands = 0 : i64, tpu.core_type = #tpu.core_type<tc>, window_params = [{transform_indices = @transform_0, window_bounds = array<i64: 2, 225>}, {pipeline_mode = #tpu.pipeline_mode<synchronous>, transform_indices = @transform_1, window_bounds = array<i64: 225, 64>}, {pipeline_mode = #tpu.pipeline_mode<synchronous>, transform_indices = @transform_2, window_bounds = array<i64: 1, 64>}, {pipeline_mode = #tpu.pipeline_mode<synchronous>, transform_indices = @transform_3, window_bounds = array<i64: 64, 64>}, {pipeline_mode = #tpu.pipeline_mode<synchronous>, transform_indices = @transform_4, window_bounds = array<i64: 1, 64>}, {pipeline_mode = #tpu.pipeline_mode<synchronous>, transform_indices = @transform_5, window_bounds = array<i64: 64, 32>}, {pipeline_mode = #tpu.pipeline_mode<synchronous>, transform_indices = @transform_6, window_bounds = array<i64: 1, 32>}, {pipeline_mode = #tpu.pipeline_mode<synchronous>, transform_indices = @transform_7, window_bounds = array<i64: 32, 8>}, {pipeline_mode = #tpu.pipeline_mode<synchronous>, transform_indices = @transform_8, window_bounds = array<i64: 1, 8>}, {transform_indices = @transform_9, window_bounds = array<i64: 2, 8>}]} {
    %c0 = arith.constant 0 : index
    %c0_0 = arith.constant 0 : index
    %0 = vector.load %arg1[%c0, %c0_0] : memref<2x225xf32, #tpu.memory_space<vmem>>, vector<2x225xf32>
    %1 = arith.truncf %0 : vector<2x225xf32> to vector<2x225xbf16>
    %c0_1 = arith.constant 0 : index
    %c0_2 = arith.constant 0 : index
    %2 = vector.load %arg2[%c0_1, %c0_2] : memref<225x64xbf16, #tpu.memory_space<vmem>>, vector<225x64xbf16>
    %cst = arith.constant dense<0.000000e+00> : vector<2x64xf32>
    %3 = tpu.matmul %1, %2, %cst {dimension_numbers = #tpu.dot_dimension_numbers<[1], [0], [0], [1], [0, 0, 1, 1], [], []>} : vector<2x225xbf16>, vector<225x64xbf16>, vector<2x64xf32> -> vector<2x64xf32>
    %c0_3 = arith.constant 0 : index
    %c0_4 = arith.constant 0 : index
    %4 = vector.load %arg3[%c0_3, %c0_4] : memref<1x64xf32, #tpu.memory_space<vmem>>, vector<1x64xf32>
    %5 = vector.broadcast %4 : vector<1x64xf32> to vector<2x64xf32>
    %6 = arith.addf %3, %5 : vector<2x64xf32>
    %cst_5 = arith.constant 0.000000e+00 : f32
    %7 = vector.broadcast %cst_5 : f32 to vector<2x64xf32>
    %8 = arith.cmpf oge, %6, %7 : vector<2x64xf32>
    %cst_6 = arith.constant 0.00999999977 : f32
    %9 = vector.broadcast %cst_6 : f32 to vector<2x64xf32>
    %10 = arith.mulf %9, %6 : vector<2x64xf32>
    %11 = arith.select %8, %6, %10 : vector<2x64xi1>, vector<2x64xf32>
    %12 = arith.truncf %11 : vector<2x64xf32> to vector<2x64xbf16>
    %c0_7 = arith.constant 0 : index
    %c0_8 = arith.constant 0 : index
    %13 = vector.load %arg4[%c0_7, %c0_8] : memref<64x64xbf16, #tpu.memory_space<vmem>>, vector<64x64xbf16>
    %cst_9 = arith.constant dense<0.000000e+00> : vector<2x64xf32>
    %14 = tpu.matmul %12, %13, %cst_9 {dimension_numbers = #tpu.dot_dimension_numbers<[1], [0], [0], [1], [0, 0, 1, 1], [], []>} : vector<2x64xbf16>, vector<64x64xbf16>, vector<2x64xf32> -> vector<2x64xf32>
    %c0_10 = arith.constant 0 : index
    %c0_11 = arith.constant 0 : index
    %15 = vector.load %arg5[%c0_10, %c0_11] : memref<1x64xf32, #tpu.memory_space<vmem>>, vector<1x64xf32>
    %16 = vector.broadcast %15 : vector<1x64xf32> to vector<2x64xf32>
    %17 = arith.addf %14, %16 : vector<2x64xf32>
    %cst_12 = arith.constant 0.000000e+00 : f32
    %18 = vector.broadcast %cst_12 : f32 to vector<2x64xf32>
    %19 = arith.cmpf oge, %17, %18 : vector<2x64xf32>
    %cst_13 = arith.constant 0.00999999977 : f32
    %20 = vector.broadcast %cst_13 : f32 to vector<2x64xf32>
    %21 = arith.mulf %20, %17 : vector<2x64xf32>
    %22 = arith.select %19, %17, %21 : vector<2x64xi1>, vector<2x64xf32>
    %23 = arith.truncf %22 : vector<2x64xf32> to vector<2x64xbf16>
    %c0_14 = arith.constant 0 : index
    %c0_15 = arith.constant 0 : index
    %24 = vector.load %arg6[%c0_14, %c0_15] : memref<64x32xbf16, #tpu.memory_space<vmem>>, vector<64x32xbf16>
    %cst_16 = arith.constant dense<0.000000e+00> : vector<2x32xf32>
    %25 = tpu.matmul %23, %24, %cst_16 {dimension_numbers = #tpu.dot_dimension_numbers<[1], [0], [0], [1], [0, 0, 1, 1], [], []>} : vector<2x64xbf16>, vector<64x32xbf16>, vector<2x32xf32> -> vector<2x32xf32>
    %c0_17 = arith.constant 0 : index
    %c0_18 = arith.constant 0 : index
    %26 = vector.load %arg7[%c0_17, %c0_18] : memref<1x32xf32, #tpu.memory_space<vmem>>, vector<1x32xf32>
    %27 = vector.broadcast %26 : vector<1x32xf32> to vector<2x32xf32>
    %28 = arith.addf %25, %27 : vector<2x32xf32>
    %cst_19 = arith.constant 0.000000e+00 : f32
    %29 = vector.broadcast %cst_19 : f32 to vector<2x32xf32>
    %30 = arith.cmpf oge, %28, %29 : vector<2x32xf32>
    %cst_20 = arith.constant 0.00999999977 : f32
    %31 = vector.broadcast %cst_20 : f32 to vector<2x32xf32>
    %32 = arith.mulf %31, %28 : vector<2x32xf32>
    %33 = arith.select %30, %28, %32 : vector<2x32xi1>, vector<2x32xf32>
    %34 = arith.truncf %33 : vector<2x32xf32> to vector<2x32xbf16>
    %c0_21 = arith.constant 0 : index
    %c0_22 = arith.constant 0 : index
    %35 = vector.load %arg8[%c0_21, %c0_22] : memref<32x8xbf16, #tpu.memory_space<vmem>>, vector<32x8xbf16>
    %cst_23 = arith.constant dense<0.000000e+00> : vector<2x8xf32>
    %36 = tpu.matmul %34, %35, %cst_23 {dimension_numbers = #tpu.dot_dimension_numbers<[1], [0], [0], [1], [0, 0, 1, 1], [], []>} : vector<2x32xbf16>, vector<32x8xbf16>, vector<2x8xf32> -> vector<2x8xf32>
    %c0_24 = arith.constant 0 : index
    %c0_25 = arith.constant 0 : index
    %37 = vector.load %arg9[%c0_24, %c0_25] : memref<1x8xf32, #tpu.memory_space<vmem>>, vector<1x8xf32>
    %38 = vector.broadcast %37 : vector<1x8xf32> to vector<2x8xf32>
    %39 = arith.addf %36, %38 : vector<2x8xf32>
    %c0_26 = arith.constant 0 : index
    %c0_27 = arith.constant 0 : index
    %40 = vector.load %arg10[%c0_26, %c0_27] : memref<2x8xf32, #tpu.memory_space<vmem>>, vector<2x8xf32>
    tpu.vector_store %arg10[%c0_26, %c0_27], %39 {strides = array<i32>} : memref<2x8xf32, #tpu.memory_space<vmem>>, vector<2x8xf32>,
    return
  }
  func.func @transform_0(%arg0: i32) -> (i32, i32) {
    %c0_i32 = arith.constant 0 : i32
    %c0_i32_0 = arith.constant 0 : i32
    return %arg0, %c0_i32 : i32, i32
  }
  func.func @transform_1(%arg0: i32) -> (i32, i32) {
    %c0_i32 = arith.constant 0 : i32
    %c0_i32_0 = arith.constant 0 : i32
    %c0_i32_1 = arith.constant 0 : i32
    return %c0_i32, %c0_i32_0 : i32, i32
  }
  func.func @transform_2(%arg0: i32) -> (i32, i32) {
    %c0_i32 = arith.constant 0 : i32
    %c0_i32_0 = arith.constant 0 : i32
    %c0_i32_1 = arith.constant 0 : i32
    return %c0_i32, %c0_i32_0 : i32, i32
  }
  func.func @transform_3(%arg0: i32) -> (i32, i32) {
    %c0_i32 = arith.constant 0 : i32
    %c0_i32_0 = arith.constant 0 : i32
    %c0_i32_1 = arith.constant 0 : i32
    return %c0_i32, %c0_i32_0 : i32, i32
  }
  func.func @transform_4(%arg0: i32) -> (i32, i32) {
    %c0_i32 = arith.constant 0 : i32
    %c0_i32_0 = arith.constant 0 : i32
    %c0_i32_1 = arith.constant 0 : i32
    return %c0_i32, %c0_i32_0 : i32, i32
  }
  func.func @transform_5(%arg0: i32) -> (i32, i32) {
    %c0_i32 = arith.constant 0 : i32
    %c0_i32_0 = arith.constant 0 : i32
    %c0_i32_1 = arith.constant 0 : i32
    return %c0_i32, %c0_i32_0 : i32, i32
  }
  func.func @transform_6(%arg0: i32) -> (i32, i32) {
    %c0_i32 = arith.constant 0 : i32
    %c0_i32_0 = arith.constant 0 : i32
    %c0_i32_1 = arith.constant 0 : i32
    return %c0_i32, %c0_i32_0 : i32, i32
  }
  func.func @transform_7(%arg0: i32) -> (i32, i32) {
    %c0_i32 = arith.constant 0 : i32
    %c0_i32_0 = arith.constant 0 : i32
    %c0_i32_1 = arith.constant 0 : i32
    return %c0_i32, %c0_i32_0 : i32, i32
  }
  func.func @transform_8(%arg0: i32) -> (i32, i32) {
    %c0_i32 = arith.constant 0 : i32
    %c0_i32_0 = arith.constant 0 : i32
    %c0_i32_1 = arith.constant 0 : i32
    return %c0_i32, %c0_i32_0 : i32, i32
  }
  func.func @transform_9(%arg0: i32) -> (i32, i32) {
    %c0_i32 = arith.constant 0 : i32
    %c0_i32_0 = arith.constant 0 : i32
    return %arg0, %c0_i32 : i32, i32
  }
}

</mosaic_0001>

<bundles_post_ra>
// kernel: mknn_forward.1
= control target key start
LH: loop header
LB: loop body
LE: loop exit
PB: predicated region body
PF: predicated region fallthrough
CT: control target
= control target key end

     0   :  { %v611_v1 = vmov 0   ;;  %v612_v3 = vmov 0.0   ;;  %vm171_vm0 = vcmask 793600   ;;  %s776_s0 = inlined_call_operand.vmem [shape: f32[2,225], index: 0, kind: input, shape index: {}]   ;;  %s777_s1 = inlined_call_operand.vmem [shape: bf16[225,64], index: 1, kind: input, shape index: {}]   ;;  %s778_s2 = inlined_call_operand.vmem [shape: f32[1,64], index: 2, kind: input, shape index: {}]   ;;  %s779_s3 = inlined_call_operand.vmem [shape: bf16[64,64], index: 3, kind: input, shape index: {}]   ;;  %s780_s4 = inlined_call_operand.vmem [shape: f32[1,64], index: 4, kind: input, shape index: {}]   ;;  %s781_s5 = inlined_call_operand.vmem [shape: bf16[64,32], index: 5, kind: input, shape index: {}]   ;;  %s782_s6 = inlined_call_operand.vmem [shape: f32[1,32], index: 6, kind: input, shape index: {}]   ;;  %s783_s7 = inlined_call_operand.vmem [shape: bf16[32,8], index: 7, kind: input, shape index: {}]   ;;  %s784_s8 = inlined_call_operand.vmem [shape: f32[1,8], index: 8, kind: input, shape index: {}]   ;;  %s785_s9 = inlined_call_operand.hbm [shape: f32[2,8], index: 9, kind: output, shape index: {}]  }
   0x1   :  { %v564_v0 = vld [vmem:[%s777_s1 + $0x38] sm:$0xff]   ;;  %181 = vmatprep.subr.bf16.mxu0 %v611_v1  ;;  %v565_v2 = vld [vmem:[%s777_s1 + $0x30] sm:$0xff]   ;;  %528 = vmatprep.subr.bf16.mxu1 %v612_v3  ;;  %v566_v4 = vld [vmem:[%s777_s1 + $0x28] sm:$0xff]  }
   0x2   :  { %182 = vmatpush1.bf16.msra.mxu0 %v564_v0  ;;  %v567_v5 = vld [vmem:[%s777_s1 + $0x20] sm:$0xff]   ;;  %v568_v6 = vld [vmem:[%s777_s1 + $0x18] sm:$0xff]   ;;  %v569_v10 = vld [vmem:[%s777_s1 + $0x10] sm:$0xff]  }
   0x3   :  { %183 = vmatprep.subr.bf16.mxu0 %v611_v1  ;;  %v481_v7 = vld.sshfl [vmem:[%s776_s0] sm:$0x33 pattern:$0x76325410]  ;;  %v579_v9 = vld [vmem:[%s779_s3 + $0x18] sm:$0xff]   ;;  %v580_v11 = vld [vmem:[%s779_s3 + $0x10] sm:$0xff]  }
   0x4   :  { %v43_v8 = vcombine.high %v481_v7, %v481_v7  ;;  %529 = vmatpush3.bf16.msra.mxu1 %v579_v9  ;;  %v570_v13 = vld [vmem:[%s777_s1 + $0x8] sm:$0xff]  }
   0x5   :  { %530 = vmatprep.subr.bf16.mxu1 %v612_v3 }
   0x6   :  { %184 = vmatpush1.bf16.msra.mxu0 %v565_v2  ;;  %v47_v12 = vpack.c.bf16 %v43_v8, %v43_v8 }
   0x7   :  { %185 = vmatprep.subr.bf16.mxu0 %v611_v1 }
   0x8   :  { %498 = vmatprep.mubr.msk.bf16.mxu0 %vm171_vm0, %v47_v12  ;;  %531 = vmatpush3.bf16.msra.mxu1 %v580_v11 }
   0x9   :  { %532 = vmatprep.subr.bf16.mxu1 %v612_v3 }
   0xa   :  { %186 = vmatpush1.bf16.msra.mxu0 %v566_v4 }
   0xb   :  { %187 = vmatprep.subr.bf16.mxu0 %v611_v1 }
   0xe   :  { %188 = vmatpush1.bf16.msra.mxu0 %v567_v5 }
   0xf   :  { %189 = vmatprep.subr.bf16.mxu0 %v611_v1 }
  0x12   :  { %190 = vmatpush1.bf16.msra.mxu0 %v568_v6 }
  0x13   :  { %191 = vmatprep.subr.bf16.mxu0 %v611_v1 }
  0x16   :  { %192 = vmatpush1.bf16.msra.mxu0 %v569_v10 }
  0x17   :  { %193 = vmatprep.subr.bf16.mxu0 %v611_v1 }
  0x18   :  { %14 = vsyncpa [#allocation3], 0  ;;  %vm175_vm1 = vcmask 1040384   ;;  %v571_v14 = vld [vmem:[%s777_s1] sm:$0xff]   ;;  %v573_v18 = vld [vmem:[%s777_s1 + $0x68] sm:$0xff]   ;;  %v46_v24 = vpack.c.bf16 %v481_v7, %v481_v7  ;;  %vm613_vm2 = vmmov 0  }
  0x19   :  { %v572_v15 = vld [vmem:[%s777_s1 + $0x70] ss:$0 sps:$4 sm:$0x11]   ;;  %v177_v16 = vsel %vm175_vm1, 65535, %v611_v1  ;;  %v574_v19 = vld [vmem:[%s777_s1 + $0x60] sm:$0xff]   ;;  %v575_v20 = vld [vmem:[%s777_s1 + $0x58] sm:$0xff]   ;;  %536 = vmatprep.mubr.msk.bf16.mxu1 %vm613_vm2, %v612_v3 }
  0x1a   :  { %194 = vmatpush1.bf16.msra.mxu0 %v570_v13  ;;  %v179_v17 = vand.u32 %v572_v15, %v177_v16  ;;  %v576_v21 = vld [vmem:[%s777_s1 + $0x50] sm:$0xff]   ;;  %v577_v22 = vld [vmem:[%s777_s1 + $0x48] sm:$0xff]   ;;  %v578_v23 = vld [vmem:[%s777_s1 + $0x40] sm:$0xff]   ;;  %vm264_vm4 = vcmask 523264   ;;  %vm421_vm7 = vcmask 261120   ;;  %vm465_vm8 = vcmask 58368  }
  0x1b   :  { %195 = vmatprep.subr.bf16.mxu0 %v611_v1  ;;  %v581_v25 = vld [vmem:[%s779_s3 + $0x8] sm:$0xff]   ;;  %v582_v26 = vld [vmem:[%s779_s3] sm:$0xff]   ;;  %v583_v34 = vld [vmem:[%s781_s5 + $0x18] sm:$0xff]  }
  0x1c   :  { %533 = vmatpush3.bf16.msra.mxu1 %v581_v25  ;;  %v482_v27 = vld [vmem:[%s778_s2] ss:$0 sm:$0xff]  ;;  %v584_v37 = vld [vmem:[%s781_s5 + $0x10] sm:$0xff]   ;;  %v585_v38 = vld [vmem:[%s781_s5 + $0x8] sm:$0xff]  }
  0x1d   :  { %534 = vmatprep.subr.bf16.mxu1 %v612_v3  ;;  %v586_v39 = vld [vmem:[%s781_s5] sm:$0xff]   ;;  %v587_v49 = vld [vmem:[%s783_s7 + $0x8] sm:$0xff]  }
  0x1e   :  { %196 = vmatpush1.bf16.msra.mxu0 %v571_v14  ;;  %v499_v40 = vld [vmem:[%s780_s4] ss:$0 sm:$0xff] }
  0x1f   :  { %199 = vmatprep.subr.bf16.mxu0 %v611_v1  ;;  %v588_v50 = vld [vmem:[%s783_s7] sm:$0xff]   ;;  %s614_s7 = smov [#allocation2]  }
  0x20   :  { %535 = vmatpush3.bf16.msra.mxu1 %v582_v26  ;;  %v505_v51 = vld [vmem:[%s782_s6] ss:$0 sm:$0xff]  ;;  %s473_s20 = sshll.u32 %s614_s7, 4  ;;  %s474_s20 = int_to_ptr.vmem [resolvable:$true] %s473_s20 }
  0x21   :  { %540 = vmatprep.subr.bf16.mxu1 %v612_v3  ;;  %v511_v60 = vld [vmem:[%s784_s8] ss:$0 sm:$0xff]  ;;  %s589_s6 = scalar_lea.vmem %s474_s20, 32  ;;  %p594_p1 = scmp.lt.s32.totalorder %s474_s20, %s474_s20 }
  0x22   :  { %200 = vmatpush2.bf16.msra.mxu0 %v179_v17  ;;  %p590_p0 = scmp.ne.s32.totalorder %s474_s20, %s589_s6  ;;  %p595_p2 = scmp.lt.s32.totalorder %s589_s6, %s589_s6 }
  0x23   :  { %201 = vmatprep.subr.bf16.mxu0 %v611_v1 }
  0x24   :  { %p596_p3 = por %p595_p2, %p594_p1 }
  0x26   :  { %202 = vmatpush2.bf16.msra.mxu0 %v573_v18  ;;  %p597_p4 = pnand %p596_p3, %p590_p0 }
  0x27   :  { %203 = vmatprep.subr.bf16.mxu0 %v611_v1 }
  0x2a   :  { %204 = vmatpush2.bf16.msra.mxu0 %v574_v19 }
  0x2b   :  { %205 = vmatprep.subr.bf16.mxu0 %v611_v1 }
  0x2e   :  { %206 = vmatpush2.bf16.msra.mxu0 %v575_v20 }
  0x2f   :  { %207 = vmatprep.subr.bf16.mxu0 %v611_v1 }
  0x32   :  { %208 = vmatpush2.bf16.msra.mxu0 %v576_v21 }
  0x33   :  { %209 = vmatprep.subr.bf16.mxu0 %v611_v1 }
  0x36   :  { %210 = vmatpush2.bf16.msra.mxu0 %v577_v22 }
  0x37   :  { %211 = vmatprep.subr.bf16.mxu0 %v611_v1 }
  0x3a   :  { %212 = vmatpush2.bf16.msra.mxu0 %v578_v23 }
  0x3d   :  { %214 = vmatmul.mubr.bf16.vlgmr.msra.gmra.mxu0 %v46_v24 }
  0xfd   :  { %v215_v28 = vpop.f32.mrf.mxu0 }
  0xfe   :  { %v216_v29 = vadd.f32 %v482_v27, %v215_v28 }
  0xff   :  { %v217_v30 = vpop.f32.mrf.mxu0 }
 0x100   :  { %vm221_vm3 = vcmp.ge.f32.partialorder %v216_v29, 0.0  ;;  %v222_v31 = vmul.f32 0.01, %v216_v29 }
 0x101   :  { %v218_v32 = vpop.f32.mrf.mxu0 }
 0x102   :  { %v223_v33 = vsel %vm221_vm3, %v216_v29, %v222_v31 }
 0x103   :  { %v224_v35 = vpack.c.bf16 %v223_v33, %v223_v33  ;;  %v219_v36 = vpop.f32.mrf.mxu0 }
 0x105   :  { %537 = vmatmul.mubr.msk.bf16.vlgmr.msra.gmra.mxu1 %vm264_vm4, %v224_v35 }
 0x106   :  { %541 = vmatpush3.bf16.msra.mxu1 %v583_v34  ;;  %548 = vmatprep.mubr.msk.bf16.mxu1 %vm613_vm2, %v612_v3 }
 0x107   :  { %542 = vmatprep.subr.bf16.mxu1 %v612_v3 }
 0x10a   :  { %543 = vmatpush3.bf16.msra.mxu1 %v584_v37 }
 0x10b   :  { %544 = vmatprep.subr.bf16.mxu1 %v612_v3 }
 0x10e   :  { %545 = vmatpush3.bf16.msra.mxu1 %v585_v38 }
 0x10f   :  { %546 = vmatprep.subr.bf16.mxu1 %v612_v3 }
 0x112   :  { %547 = vmatpush3.bf16.msra.mxu1 %v586_v39 }
 0x113   :  { %552 = vmatprep.subr.bf16.mxu1 %v612_v3 }
 0x1c5   :  { %v302_v41 = vpop.f32.mrf.mxu1 }
 0x1c6   :  { %v303_v42 = vadd.f32 %v499_v40, %v302_v41 }
 0x1c7   :  { %v538_v43 = vpop.f32.mrf.mxu1 }
 0x1c8   :  { %vm308_vm5 = vcmp.ge.f32.partialorder %v303_v42, 0.0  ;;  %v309_v44 = vmul.f32 0.01, %v303_v42 }
 0x1c9   :  { %v305_v45 = vpop.f32.mrf.mxu1 }
 0x1ca   :  { %v310_v46 = vsel %vm308_vm5, %v303_v42, %v309_v44 }
 0x1cb   :  { %v311_v47 = vpack.c.bf16 %v310_v46, %v310_v46  ;;  %v539_v48 = vpop.f32.mrf.mxu1 }
 0x1cd   :  { %549 = vmatmul.mubr.msk.bf16.vlgmr.msra.gmra.mxu1 %vm264_vm4, %v311_v47 }
 0x1ce   :  { %556 = vmatprep.mubr.msk.bf16.mxu1 %vm613_vm2, %v612_v3  ;;  %553 = vmatpush3.bf16.msra.mxu1 %v587_v49 }
 0x1cf   :  { %554 = vmatprep.subr.bf16.mxu1 %v612_v3 }
 0x1d2   :  { %555 = vmatpush3.bf16.msra.mxu1 %v588_v50 }
 0x28d   :  { %v388_v52 = vpop.f32.mrf.mxu1 }
 0x28e   :  { %v389_v53 = vadd.f32 %v505_v51, %v388_v52 }
 0x28f   :  { %v550_v54 = vpop.f32.mrf.mxu1 }
 0x290   :  { %vm394_vm6 = vcmp.ge.f32.partialorder %v389_v53, 0.0  ;;  %v395_v55 = vmul.f32 0.01, %v389_v53 }
 0x291   :  { %v391_v56 = vpop.f32.mrf.mxu1 }
 0x292   :  { %v396_v57 = vsel %vm394_vm6, %v389_v53, %v395_v55 }
 0x293   :  { %v397_v58 = vpack.c.bf16 %v396_v57, %v396_v57  ;;  %v551_v59 = vpop.f32.mrf.mxu1 }
 0x295   :  { %557 = vmatmul.mubr.msk.bf16.vlgmr.msra.gmra.mxu1 %vm421_vm7, %v397_v58 }
 0x355   :  { %v459_v61 = vpop.f32.mrf.mxu1 }
 0x356   :  { %v460_v62 = vadd.f32 %v511_v60, %v459_v61 }
 0x357   :  { %v558_v63 = vpop.f32.mrf.mxu1 }
 0x358   :  { %466 = vst.msk [vmem:[#allocation2] sm:$0x3] %vm465_vm8, %v460_v62 }
 0x359   :  { %v462_v0 = vpop.f32.mrf.mxu1 }
 0x35a   :  { %600 = shalt.err (!%p597_p4)
}
 0x35b   :  { %476 = dma.vmem_to_hbm [thread:$0]  %s474_s20, 32, %s785_s9, [#allocation3]   ;;  %v559_v1 = vpop.f32.mrf.mxu1 }
 0x35c   :  { %609 = dma.done.wait [#allocation3], 32  }
 0x35d   :  { %610 = vsyncadd [#allocation3], 4294967264 }
 0x35e   :  { %480 = vsyncpa [#allocation3], 1 }

</bundles_post_ra>
